<compile_context>
chip_gen: v6e
topology: v6e:2x2x1
jax: 0.10.0
libtpu: 0.0.40
codegen_flags: <defaults>
</compile_context>

<pallas_src>
import functools

import jax
import jax.numpy as jnp
from jax.experimental import pallas as pl
from jax.experimental.pallas import tpu as pltpu

EPS = 1e-5  # torch.nn.BatchNorm2d default


def _pick_batch_block(N):
    """Batch items per grid step.

    Coalesce several images per step to amortize the ~0.35 us fixed per-step cost,
    but keep >= 2 grid steps whenever possible so the "parallel" batch axis can be
    sharded across v7x's two TensorCores."""
    if N <= 2:
        return 1
    nb = min(max(1, N // 2), 8)     # cap static unroll / per-step VMEM
    while N % nb:
        nb -= 1
    return max(nb, 1)


def _make_dilconv_kernel(K, dil, NB, Ho1, WoCo):
    def kernel(xp_ref, b_ref, y_ref, ssum_ref, ssq_ref):
        # xp_ref : (NB, Hp, Wp*C)   padded, ReLU'd input (lane-dense W*C)
        # b_ref  : (K, Wp*C, Wo1*Cout) banded DW+PW matrices (one per kernel row kh)
        # y_ref  : (NB, Ho1, Wo1*Cout) conv output (lane-dense W*Cout)
        ssum = jnp.zeros((1, WoCo), jnp.float32)
        ssq = jnp.zeros((1, WoCo), jnp.float32)
        for b in range(NB):
            acc = jnp.zeros((Ho1, WoCo), jnp.float32)
            for kh in range(K):
                # sublane-offset row slice taken on the *ref* (rides the vector-load
                # address path -> no vreg rotates), straight into the MXU.
                lhs = xp_ref[b, pl.ds(kh * dil, Ho1), :]
                acc = acc + jnp.dot(lhs, b_ref[kh],
                                    preferred_element_type=jnp.float32)
            y_ref[b] = acc                                   # (Ho1, Wo1*Cout) store
            # BatchNorm batch-stat partials, reduced over (batch-in-block, Ho).
            ssum = ssum + jnp.sum(acc, axis=0, keepdims=True)
            ssq = ssq + jnp.sum(acc * acc, axis=0, keepdims=True)
        ssum_ref[0] = ssum
        ssq_ref[0] = ssq

    return kernel


def _dilconv_block(xp_flat, B, K, dil, C, Cout, Ho1, Wo1, NB):
    """Fused ReLU(+pad in wrapper) -> dilated DW conv -> 1x1 conv + BN partial stats."""
    N, Hp, WpC = xp_flat.shape
    WoCo = Wo1 * Cout
    G = N // NB
    kernel = _make_dilconv_kernel(K, dil, NB, Ho1, WoCo)
    return pl.pallas_call(
        kernel,
        out_shape=(
            jax.ShapeDtypeStruct((N, Ho1, WoCo), jnp.float32),   # conv output (flat)
            jax.ShapeDtypeStruct((G, 1, WoCo), jnp.float32),     # per-step sum
            jax.ShapeDtypeStruct((G, 1, WoCo), jnp.float32),     # per-step sum of sq.
        ),
        grid_spec=pltpu.PrefetchScalarGridSpec(
            num_scalar_prefetch=0,
            grid=(G,),
            in_specs=[
                pl.BlockSpec((NB, Hp, WpC), lambda g: (g, 0, 0)),
                pl.BlockSpec((K, WpC, WoCo), lambda g: (0, 0, 0)),
            ],
            out_specs=[
                pl.BlockSpec((NB, Ho1, WoCo), lambda g: (g, 0, 0)),
                pl.BlockSpec((1, 1, WoCo), lambda g: (g, 0, 0)),
                pl.BlockSpec((1, 1, WoCo), lambda g: (g, 0, 0)),
            ],
        ),
        compiler_params=pltpu.CompilerParams(
            dimension_semantics=("parallel",),
            vmem_limit_bytes=32 * 1024 * 1024,
        ),
    )(xp_flat, B)


def dilconv_forward(x_nchw, params, kernel_size, stride, padding, dilation):
    K, pad, dil = kernel_size, padding, dilation
    x = jnp.transpose(x_nchw, (0, 2, 3, 1)).astype(jnp.float32)   # NCHW -> NHWC
    N, H, W, C = x.shape
    Cout = params["pw"].shape[1]

    # ReLU + zero pad + (W,C)->W*C flatten, fused by XLA into the single copy that
    # materializes the kernel input (ReLU(0) == 0, so pad/ReLU commute).
    xr = jnp.maximum(x, 0.0)
    xp = jnp.pad(xr, ((0, 0), (pad, pad), (pad, pad), (0, 0)))
    Hp, Wp = H + 2 * pad, W + 2 * pad
    xp_flat = xp.reshape(N, Hp, Wp * C)

    # stride-1 output extent of the dilated KxK depthwise conv
    Ho1 = Hp - dil * (K - 1)
    Wo1 = Wp - dil * (K - 1)

    # Banded DW+PW fold: B[kh, (wo+kw*dil)*C + c, wo*Cout + co] = dw[kh,kw,c]*pw[c,co].
    # sel[kw, wo + kw*dil, wo] = 1 selects the kw-shifted W positions.
    sel = jnp.stack([jnp.eye(Wp, Wo1, k=-kw * dil, dtype=jnp.float32)
                     for kw in range(K)])                         # (K, Wp, Wo1)
    B = jnp.einsum("kpw,hkc,co->hpcwo", sel, params["dw"], params["pw"])
    B = B.reshape(K, Wp * C, Wo1 * Cout)

    NB = _pick_batch_block(N)
    y_flat, ssum, ssq = _dilconv_block(xp_flat, B, K, dil, C, Cout, Ho1, Wo1, NB)

    if stride == 1:
        y = y_flat.reshape(N, Ho1, Wo1, Cout)
        cnt = N * Ho1 * Wo1
        tot = jnp.sum(ssum.reshape(-1, Wo1, Cout), axis=(0, 1))
        tot2 = jnp.sum(ssq.reshape(-1, Wo1, Cout), axis=(0, 1))
    else:
        # TODO(synk): stride>1 reuses the stride-1 kernel and subsamples (1x1 conv
        # commutes with subsampling); a strided index_map / in-kernel strided row
        # slice would skip the redundant spatial work and keep the fused BN partials.
        y = y_flat.reshape(N, Ho1, Wo1, Cout)[:, ::stride, ::stride, :]
        cnt = y.shape[0] * y.shape[1] * y.shape[2]
        tot = jnp.sum(y, axis=(0, 1, 2))
        tot2 = jnp.sum(jnp.square(y), axis=(0, 1, 2))

    # Training-mode BatchNorm (biased batch variance), folded into one per-channel
    # affine that XLA fuses with the NHWC -> NCHW transpose.
    # NOTE: E[y^2]-mean^2 is fine at these sizes/tolerances; for very large N*H*W use a
    # centered (two-pass / Welford) reduction instead.
    mean = tot / cnt
    var = tot2 / cnt - jnp.square(mean)
    scale = params["gamma"] * jax.lax.rsqrt(var + EPS)
    shift = params["beta"] - mean * scale
    out = y * scale + shift
    return jnp.transpose(out, (0, 3, 1, 2))                       # NHWC -> NCHW


# ----------------------------- pure-JAX reference -----------------------------
def _ref_dilconv(x_nchw, params, K, stride, pad, dil):
    x = jnp.transpose(x_nchw, (0, 2, 3, 1)).astype(jnp.float32)
    C = x.shape[-1]

    y = jnp.maximum(x, 0.0)
    w_dw = params["dw"][:, :, None, :]                      # (K, K, 1, C) HWIO grouped
    y = jax.lax.conv_general_dilated(
        y, w_dw, (stride, stride), [(pad, pad), (pad, pad)],
        rhs_dilation=(dil, dil),
        dimension_numbers=("NHWC", "HWIO", "NHWC"),
        feature_group_count=C)
    w_pw = params["pw"][None, None, :, :]                   # (1, 1, C_in, C_out)
    y = jax.lax.conv_general_dilated(
        y, w_pw, (1, 1), [(0, 0), (0, 0)],
        dimension_numbers=("NHWC", "HWIO", "NHWC"))
    mean = jnp.mean(y, axis=(0, 1, 2))
    var = jnp.mean(jnp.square(y - mean), axis=(0, 1, 2))    # biased, as torch uses
    y = (y - mean) / jnp.sqrt(var + EPS) * params["gamma"] + params["beta"]
    return jnp.transpose(y, (0, 3, 1, 2))


if __name__ == "__main__":
    # DARTS dil_conv_3x3: kernel 3, stride 1, padding 2, dilation 2
    N, C_in, C_out, H, W = 2, 4, 8, 16, 16
    K, stride, pad, dil = 3, 1, 2, 2

    key = jax.random.PRNGKey(0)
    kx, k1, k2 = jax.random.split(key, 3)
    params = {
        # depthwise weights stored as (K, K, C): w[kh, kw, c] == torch w[c, 0, kh, kw]
        "dw": jax.random.normal(k1, (K, K, C_in), jnp.float32) * 0.2,
        # pointwise weights stored as (C_in, C_out): w[ci, co] == torch w[co, ci, 0, 0]
        "pw": jax.random.normal(k2, (C_in, C_out), jnp.float32) * 0.2,
        # BatchNorm2d(affine=True) at PyTorch default init: weight=1, bias=0
        "gamma": jnp.ones((C_out,), jnp.float32),
        "beta": jnp.zeros((C_out,), jnp.float32),
    }
    x = jax.random.normal(kx, (N, C_in, H, W), jnp.float32)

    fwd = jax.jit(functools.partial(dilconv_forward, kernel_size=K, stride=stride,
                                    padding=pad, dilation=dil))
    out = jax.block_until_ready(fwd(x, params))
    ref = jax.block_until_ready(_ref_dilconv(x, params, K, stride, pad, dil))

    Ho = (H + 2 * pad - dil * (K - 1) - 1) // stride + 1
    assert out.shape == (N, C_out, Ho, Ho), out.shape
    err = float(jnp.max(jnp.abs(out - ref)))
    assert jnp.allclose(out, ref, rtol=1e-4, atol=1e-4), err
    print("KERNEL_OK")
</pallas_src>

<mosaic_0001>
module attributes {stable_mosaic.version = 11 : i64} {
  func.func @kernel(%arg0: i32, %arg1: memref<1x20x80xf32, #tpu.memory_space<vmem>>, %arg2: memref<3x80x128xf32, #tpu.memory_space<vmem>>, %arg3: memref<1x16x128xf32, #tpu.memory_space<vmem>>, %arg4: memref<1x1x128xf32, #tpu.memory_space<vmem>>, %arg5: memref<1x1x128xf32, #tpu.memory_space<vmem>>) attributes {dimension_semantics = [#tpu.dimension_semantics<parallel>], iteration_bounds = array<i64: 2>, scalar_prefetch = 0 : i64, scratch_operands = 0 : i64, tpu.core_type = #tpu.core_type<tc>, window_params = [{transform_indices = @transform_0, window_bounds = array<i64: 1, 20, 80>}, {pipeline_mode = #tpu.pipeline_mode<synchronous>, transform_indices = @transform_1, window_bounds = array<i64: 3, 80, 128>}, {transform_indices = @transform_2, window_bounds = array<i64: 1, 16, 128>}, {transform_indices = @transform_3, window_bounds = array<i64: 1, 1, 128>}, {transform_indices = @transform_4, window_bounds = array<i64: 1, 1, 128>}]} {
    %cst = arith.constant 0.000000e+00 : f32
    %0 = vector.broadcast %cst : f32 to vector<1x128xf32>
    %cst_0 = arith.constant 0.000000e+00 : f32
    %1 = vector.broadcast %cst_0 : f32 to vector<1x128xf32>
    %cst_1 = arith.constant 0.000000e+00 : f32
    %2 = vector.broadcast %cst_1 : f32 to vector<16x128xf32>
    %c0 = arith.constant 0 : index
    %c0_2 = arith.constant 0 : index
    %c0_3 = arith.constant 0 : index
    %3 = vector.load %arg1[%c0, %c0_2, %c0_3] : memref<1x20x80xf32, #tpu.memory_space<vmem>>, vector<1x16x80xf32>
    %4 = vector.shape_cast %3 : vector<1x16x80xf32> to vector<16x80xf32>
    %c0_4 = arith.constant 0 : index
    %c0_5 = arith.constant 0 : index
    %c0_6 = arith.constant 0 : index
    %5 = vector.load %arg2[%c0_4, %c0_5, %c0_6] : memref<3x80x128xf32, #tpu.memory_space<vmem>>, vector<1x80x128xf32>
    %6 = vector.shape_cast %5 : vector<1x80x128xf32> to vector<80x128xf32>
    %cst_7 = arith.constant dense<0.000000e+00> : vector<16x128xf32>
    %7 = tpu.matmul %4, %6, %cst_7 {dimension_numbers = #tpu.dot_dimension_numbers<[1], [0], [0], [1], [0, 0, 1, 1], [], []>} : vector<16x80xf32>, vector<80x128xf32>, vector<16x128xf32> -> vector<16x128xf32>
    %8 = arith.addf %2, %7 : vector<16x128xf32>
    %c0_8 = arith.constant 0 : index
    %c2 = arith.constant 2 : index
    %c0_9 = arith.constant 0 : index
    %9 = vector.load %arg1[%c0_8, %c2, %c0_9] : memref<1x20x80xf32, #tpu.memory_space<vmem>>, vector<1x16x80xf32>
    %10 = vector.shape_cast %9 : vector<1x16x80xf32> to vector<16x80xf32>
    %c1 = arith.constant 1 : index
    %c0_10 = arith.constant 0 : index
    %c0_11 = arith.constant 0 : index
    %11 = vector.load %arg2[%c1, %c0_10, %c0_11] : memref<3x80x128xf32, #tpu.memory_space<vmem>>, vector<1x80x128xf32>
    %12 = vector.shape_cast %11 : vector<1x80x128xf32> to vector<80x128xf32>
    %cst_12 = arith.constant dense<0.000000e+00> : vector<16x128xf32>
    %13 = tpu.matmul %10, %12, %cst_12 {dimension_numbers = #tpu.dot_dimension_numbers<[1], [0], [0], [1], [0, 0, 1, 1], [], []>} : vector<16x80xf32>, vector<80x128xf32>, vector<16x128xf32> -> vector<16x128xf32>
    %14 = arith.addf %8, %13 : vector<16x128xf32>
    %c0_13 = arith.constant 0 : index
    %c4 = arith.constant 4 : index
    %c0_14 = arith.constant 0 : index
    %15 = vector.load %arg1[%c0_13, %c4, %c0_14] : memref<1x20x80xf32, #tpu.memory_space<vmem>>, vector<1x16x80xf32>
    %16 = vector.shape_cast %15 : vector<1x16x80xf32> to vector<16x80xf32>
    %c2_15 = arith.constant 2 : index
    %c0_16 = arith.constant 0 : index
    %c0_17 = arith.constant 0 : index
    %17 = vector.load %arg2[%c2_15, %c0_16, %c0_17] : memref<3x80x128xf32, #tpu.memory_space<vmem>>, vector<1x80x128xf32>
    %18 = vector.shape_cast %17 : vector<1x80x128xf32> to vector<80x128xf32>
    %cst_18 = arith.constant dense<0.000000e+00> : vector<16x128xf32>
    %19 = tpu.matmul %16, %18, %cst_18 {dimension_numbers = #tpu.dot_dimension_numbers<[1], [0], [0], [1], [0, 0, 1, 1], [], []>} : vector<16x80xf32>, vector<80x128xf32>, vector<16x128xf32> -> vector<16x128xf32>
    %20 = arith.addf %14, %19 : vector<16x128xf32>
    %c0_19 = arith.constant 0 : index
    %c0_20 = arith.constant 0 : index
    %c0_21 = arith.constant 0 : index
    %21 = vector.load %arg3[%c0_19, %c0_20, %c0_21] : memref<1x16x128xf32, #tpu.memory_space<vmem>>, vector<1x16x128xf32>
    %22 = vector.shape_cast %21 : vector<1x16x128xf32> to vector<16x128xf32>
    %23 = vector.shape_cast %20 : vector<16x128xf32> to vector<1x16x128xf32>
    tpu.vector_store %arg3[%c0_19, %c0_20, %c0_21], %23 {strides = array<i32>} : memref<1x16x128xf32, #tpu.memory_space<vmem>>, vector<1x16x128xf32>,
    %cst_22 = arith.constant dense<0.000000e+00> : vector<128xf32>
    %24 = vector.multi_reduction <add>, %20, %cst_22 [0] : vector<16x128xf32> to vector<128xf32>
    %25 = vector.shape_cast %24 : vector<128xf32> to vector<1x128xf32>
    %26 = arith.addf %0, %25 : vector<1x128xf32>
    %27 = arith.mulf %20, %20 : vector<16x128xf32>
    %cst_23 = arith.constant dense<0.000000e+00> : vector<128xf32>
    %28 = vector.multi_reduction <add>, %27, %cst_23 [0] : vector<16x128xf32> to vector<128xf32>
    %29 = vector.shape_cast %28 : vector<128xf32> to vector<1x128xf32>
    %30 = arith.addf %1, %29 : vector<1x128xf32>
    %c0_24 = arith.constant 0 : index
    %c0_25 = arith.constant 0 : index
    %c0_26 = arith.constant 0 : index
    %31 = vector.load %arg4[%c0_24, %c0_25, %c0_26] : memref<1x1x128xf32, #tpu.memory_space<vmem>>, vector<1x1x128xf32>
    %32 = vector.shape_cast %31 : vector<1x1x128xf32> to vector<1x128xf32>
    %33 = vector.shape_cast %26 : vector<1x128xf32> to vector<1x1x128xf32>
    tpu.vector_store %arg4[%c0_24, %c0_25, %c0_26], %33 {strides = array<i32>} : memref<1x1x128xf32, #tpu.memory_space<vmem>>, vector<1x1x128xf32>,
    %c0_27 = arith.constant 0 : index
    %c0_28 = arith.constant 0 : index
    %c0_29 = arith.constant 0 : index
    %34 = vector.load %arg5[%c0_27, %c0_28, %c0_29] : memref<1x1x128xf32, #tpu.memory_space<vmem>>, vector<1x1x128xf32>
    %35 = vector.shape_cast %34 : vector<1x1x128xf32> to vector<1x128xf32>
    %36 = vector.shape_cast %30 : vector<1x128xf32> to vector<1x1x128xf32>
    tpu.vector_store %arg5[%c0_27, %c0_28, %c0_29], %36 {strides = array<i32>} : memref<1x1x128xf32, #tpu.memory_space<vmem>>, vector<1x1x128xf32>,
    return
  }
  func.func @transform_0(%arg0: i32) -> (i32, i32, i32) {
    %c0_i32 = arith.constant 0 : i32
    %c0_i32_0 = arith.constant 0 : i32
    %c0_i32_1 = arith.constant 0 : i32
    return %arg0, %c0_i32, %c0_i32_0 : i32, i32, i32
  }
  func.func @transform_1(%arg0: i32) -> (i32, i32, i32) {
    %c0_i32 = arith.constant 0 : i32
    %c0_i32_0 = arith.constant 0 : i32
    %c0_i32_1 = arith.constant 0 : i32
    %c0_i32_2 = arith.constant 0 : i32
    return %c0_i32, %c0_i32_0, %c0_i32_1 : i32, i32, i32
  }
  func.func @transform_2(%arg0: i32) -> (i32, i32, i32) {
    %c0_i32 = arith.constant 0 : i32
    %c0_i32_0 = arith.constant 0 : i32
    %c0_i32_1 = arith.constant 0 : i32
    return %arg0, %c0_i32, %c0_i32_0 : i32, i32, i32
  }
  func.func @transform_3(%arg0: i32) -> (i32, i32, i32) {
    %c0_i32 = arith.constant 0 : i32
    %c0_i32_0 = arith.constant 0 : i32
    %c0_i32_1 = arith.constant 0 : i32
    return %arg0, %c0_i32, %c0_i32_0 : i32, i32, i32
  }
  func.func @transform_4(%arg0: i32) -> (i32, i32, i32) {
    %c0_i32 = arith.constant 0 : i32
    %c0_i32_0 = arith.constant 0 : i32
    %c0_i32_1 = arith.constant 0 : i32
    return %arg0, %c0_i32, %c0_i32_0 : i32, i32, i32
  }
}

</mosaic_0001>

<bundles_post_ra>
// kernel: dilconv_forward.1
= control target key start
LH: loop header
LB: loop body
LE: loop exit
PB: predicated region body
PF: predicated region fallthrough
CT: control target
= control target key end

     0   :  { %s810_s15 = smov 0   ;;  %s943_s0 = inlined_call_operand.vmem [shape: f32[2,20,80], index: 0, kind: input, shape index: {}]   ;;  %s944_s1 = inlined_call_operand.vmem [shape: f32[3,80,128], index: 1, kind: input, shape index: {}]   ;;  %s945_s2 = inlined_call_operand.vmem [shape: f32[2,16,128], index: 2, kind: output, shape index: {0}]   ;;  %s946_s3 = inlined_call_operand.vmem [shape: f32[2,1,128], index: 3, kind: output, shape index: {1}]   ;;  %s947_s4 = inlined_call_operand.vmem [shape: f32[2,1,128], index: 4, kind: output, shape index: {2}]  }
   0x1 LB: > { %s626_s16 = sadd.s32 4294967295, %s783_s15   ;;  %p630_p0 = scmp.ge.s32.totalorder %s783_s15, 1  ;;  %s783_s15 = sphi %s810_s15, %s15_s15  }
   0x2   : > { %p167_p1 = scmp.lt.s32.totalorder %s783_s15, 3 }
   0x4   : > { %p168_p2 = pnand %p630_p0, %p167_p1 }
   0x5   : > { %p199_p3 = scmp.lt.s32.totalorder (!%p168_p2), %s626_s16, 1 }
   0x6   : > { %171 = sbr.rel (%p168_p2) target bundleno = 268 (0x10c), region = 28 }
   0xb   : > { %v643_v0 = vld [vmem:[%s944_s1 + $0x98] sm:$0xff]  ;;  %v226_v1 = vld [vmem:[%s944_s1 + $0x48] sm:$0xff]  ;;  %v642_v2 = vld [vmem:[%s944_s1 + $0x90] sm:$0xff]  ;;  %s949_s16 = smov (!%p199_p3, %s626_s16), 1  ;;  %vm240_vm0 = vcmask 654336  }
   0xc   : > { %699 = vmatprep.subr.mxu0 %v643_v0  ;;  %722 = vmatprep.subr.mxu1 %v226_v1  ;;  %v225_v3 = vld [vmem:[%s944_s1 + $0x40] sm:$0xff]  ;;  %v641_v4 = vld [vmem:[%s944_s1 + $0x88] sm:$0xff]  ;;  %v224_v5 = vld [vmem:[%s944_s1 + $0x38] sm:$0xff]  ;;  %s768_s21 = smul.u32 24, %s949_s16  ;;  %s662_s8 = sshll.u32 %s949_s16, 4 }
   0xd   : > { %700 = vmatpush3.msra.mxu0 %v643_v0  ;;  %723 = vmatpush3.msra.mxu1 %v226_v1  ;;  %v640_v6 = vld [vmem:[%s944_s1 + $0x80] sm:$0xff]  ;;  %v223_v7 = vld [vmem:[%s944_s1 + $0x30] sm:$0xff]  ;;  %v639_v8 = vld [vmem:[%s944_s1 + $0x78] sm:$0xff]  ;;  %s208_s11 = scalar_lea.vmem %s945_s2, %s662_s8  ;;  %s211_s13 = scalar_lea.vmem %s946_s3, %s949_s16 }
   0xe   : > { %701 = vmatprep.subr.mxu0 %v642_v2  ;;  %724 = vmatprep.subr.mxu1 %v225_v3  ;;  %v222_v9 = vld [vmem:[%s944_s1 + $0x28] sm:$0xff]  ;;  %v638_v10 = vld [vmem:[%s944_s1 + $0x70] sm:$0xff]  ;;  %v221_v11 = vld [vmem:[%s944_s1 + $0x20] sm:$0xff]  ;;  %s878_s6 = scalar_lea.vmem %s943_s0, %s768_s21  ;;  %s214_s18 = scalar_lea.vmem %s947_s4, %s949_s16 }
   0xf   : > { %702 = vmatpush3.msra.mxu0 %v642_v2  ;;  %725 = vmatpush3.msra.mxu1 %v225_v3  ;;  %v637_v12 = vld [vmem:[%s944_s1 + $0x68] sm:$0xff]  ;;  %v220_v13 = vld [vmem:[%s944_s1 + $0x18] sm:$0xff]  ;;  %v636_v14 = vld [vmem:[%s944_s1 + $0x60] sm:$0xff] }
  0x10   : > { %703 = vmatprep.subr.mxu0 %v641_v4  ;;  %726 = vmatprep.subr.mxu1 %v224_v5  ;;  %v219_v15 = vld [vmem:[%s944_s1 + $0x10] sm:$0xff]  ;;  %v635_v16 = vld [vmem:[%s944_s1 + $0x58] sm:$0xff]  ;;  %v218_v17 = vld [vmem:[%s944_s1 + $0x8] sm:$0xff] }
  0x11   : > { %704 = vmatpush3.msra.mxu0 %v641_v4  ;;  %727 = vmatpush3.msra.mxu1 %v224_v5  ;;  %v634_v18 = vld [vmem:[%s944_s1 + $0x50] sm:$0xff]  ;;  %v217_v19 = vld [vmem:[%s944_s1] sm:$0xff]  ;;  %v216_v23 = vld [vmem:[%s878_s6 + $0x8] sm:$0xff] }
  0x12   : > { %705 = vmatprep.subr.mxu0 %v640_v6  ;;  %728 = vmatprep.subr.mxu1 %v223_v7  ;;  %v227_v20 = vld [vmem:[%s878_s6 + $0x2] sm:$0xff]  ;;  %v228_v22 = vld [vmem:[%s878_s6 + $0xa] sm:$0xff]  ;;  %v655_v27 = vld [vmem:[%s944_s1 + $0xd8] sm:$0xff] }
  0x13   : > { %706 = vmatpush3.msra.mxu0 %v640_v6  ;;  %729 = vmatpush3.msra.mxu1 %v223_v7  ;;  %v215_v21 = vld [vmem:[%s878_s6] sm:$0xff]  ;;  %v657_v24 = vld [vmem:[%s944_s1 + $0xe8] sm:$0xff]  ;;  %v654_v28 = vld [vmem:[%s944_s1 + $0xd0] sm:$0xff] }
  0x14   : > { %707 = vmatprep.subr.mxu0 %v639_v8  ;;  %730 = vmatprep.subr.mxu1 %v222_v9  ;;  %v403_v25 = vld [vmem:[%s878_s6 + $0x4] sm:$0xff]  ;;  %v651_v31 = vld [vmem:[%s944_s1 + $0xb8] sm:$0xff]  ;;  %v650_v32 = vld [vmem:[%s944_s1 + $0xb0] sm:$0xff] }
  0x15   : > { %708 = vmatpush3.msra.mxu0 %v639_v8  ;;  %731 = vmatpush3.msra.mxu1 %v222_v9  ;;  %v656_v26 = vld [vmem:[%s944_s1 + $0xe0] sm:$0xff]  ;;  %v653_v29 = vld [vmem:[%s944_s1 + $0xc8] sm:$0xff] }
  0x16   : > { %709 = vmatprep.subr.mxu0 %v638_v10  ;;  %732 = vmatprep.subr.mxu1 %v221_v11  ;;  %v652_v30 = vld [vmem:[%s944_s1 + $0xc0] sm:$0xff]  ;;  %v649_v33 = vld [vmem:[%s944_s1 + $0xa8] sm:$0xff] }
  0x17   : > { %710 = vmatpush3.msra.mxu0 %v638_v10  ;;  %733 = vmatpush3.msra.mxu1 %v221_v11  ;;  %v648_v34 = vld [vmem:[%s944_s1 + $0xa0] sm:$0xff]  ;;  %v404_v35 = vld [vmem:[%s878_s6 + $0xc] sm:$0xff] }
  0x18   : > { %711 = vmatprep.subr.mxu0 %v637_v12  ;;  %734 = vmatprep.subr.mxu1 %v220_v13 }
  0x19   : > { %712 = vmatpush3.msra.mxu0 %v637_v12  ;;  %735 = vmatpush3.msra.mxu1 %v220_v13 }
  0x1a   : > { %713 = vmatprep.subr.mxu0 %v636_v14  ;;  %736 = vmatprep.subr.mxu1 %v219_v15 }
  0x1b   : > { %714 = vmatpush3.msra.mxu0 %v636_v14  ;;  %737 = vmatpush3.msra.mxu1 %v219_v15 }
  0x1c   : > { %715 = vmatprep.subr.mxu0 %v635_v16  ;;  %738 = vmatprep.subr.mxu1 %v218_v17 }
  0x1d   : > { %716 = vmatpush3.msra.mxu0 %v635_v16  ;;  %739 = vmatpush3.msra.mxu1 %v218_v17 }
  0x1e   : > { %717 = vmatprep.subr.mxu0 %v634_v18  ;;  %740 = vmatprep.subr.mxu1 %v217_v19 }
  0x1f   : > { %718 = vmatpush3.msra.mxu0 %v634_v18  ;;  %719 = vmatprep.mubr.msk.f32.mxu0 %vm240_vm0, %v227_v20 }
  0x20   : > { %741 = vmatpush3.msra.mxu1 %v217_v19  ;;  %742 = vmatprep.mubr.msk.f32.mxu1 %vm240_vm0, %v215_v21 }
  0x21   : > { %720 = vmatmul.mubr.msk.f32.vlgmr.msra.gmra.mxu0 %vm240_vm0, %v228_v22  ;;  %743 = vmatmul.mubr.msk.f32.vlgmr.msra.gmra.mxu1 %vm240_vm0, %v216_v23 }
  0x22   : > { %745 = vmatprep.subr.mxu0 %v657_v24  ;;  %765 = vmatprep.mubr.msk.f32.mxu0 %vm240_vm0, %v403_v25 }
  0x23   : > { %746 = vmatpush3.msra.mxu0 %v657_v24 }
  0x24   : > { %747 = vmatprep.subr.mxu0 %v656_v26 }
  0x25   : > { %748 = vmatpush3.msra.mxu0 %v656_v26 }
  0x26   : > { %749 = vmatprep.subr.mxu0 %v655_v27 }
  0x27   : > { %750 = vmatpush3.msra.mxu0 %v655_v27 }
  0x28   : > { %751 = vmatprep.subr.mxu0 %v654_v28 }
  0x29   : > { %752 = vmatpush3.msra.mxu0 %v654_v28 }
  0x2a   : > { %753 = vmatprep.subr.mxu0 %v653_v29 }
  0x2b   : > { %754 = vmatpush3.msra.mxu0 %v653_v29 }
  0x2c   : > { %755 = vmatprep.subr.mxu0 %v652_v30 }
  0x2d   : > { %756 = vmatpush3.msra.mxu0 %v652_v30 }
  0x2e   : > { %757 = vmatprep.subr.mxu0 %v651_v31 }
  0x2f   : > { %758 = vmatpush3.msra.mxu0 %v651_v31 }
  0x30   : > { %759 = vmatprep.subr.mxu0 %v650_v32 }
  0x31   : > { %760 = vmatpush3.msra.mxu0 %v650_v32 }
  0x32   : > { %761 = vmatprep.subr.mxu0 %v649_v33 }
  0x33   : > { %762 = vmatpush3.msra.mxu0 %v649_v33 }
  0x34   : > { %763 = vmatprep.subr.mxu0 %v648_v34 }
  0x35   : > { %764 = vmatpush3.msra.mxu0 %v648_v34 }
  0x36   : > { %766 = vmatmul.mubr.msk.f32.vlgmr.msra.gmra.mxu0 %vm240_vm0, %v404_v35 }
  0xe1   : > { %v721_v36 = vpop.f32.mrf.mxu0  ;;  %v744_v37 = vpop.f32.mrf.mxu1 }
  0xe2   : > { %v400_v40 = vadd.f32 %v744_v37, %v721_v36 }
  0xe3   : > { %v313_v38 = vpop.f32.mrf.mxu0  ;;  %v394_v39 = vpop.f32.mrf.mxu1 }
  0xe4   : > { %v395_v42 = vadd.f32 %v394_v39, %v313_v38 }
  0xf6   : > { %v767_v41 = vpop.f32.mrf.mxu0 }
  0xf7   : > { %v498_v43 = vadd.f32 %v767_v41, %v400_v40 }
  0xf8   : > { %v488_v44 = vpop.f32.mrf.mxu0 }
  0xf9   : > { %500 = vst [vmem:[%s208_s11 + $0x8] sm:$0xff] %v498_v43  ;;  %v497_v45 = vadd.f32 %v488_v44, %v395_v42  ;;  %v510_v46 = vmul.f32 %v498_v43, %v498_v43 }
  0xfb   : > { %499 = vst [vmem:[%s208_s11] sm:$0xff] %v497_v45  ;;  %v501_v47 = vadd.f32 %v498_v43, %v497_v45  ;;  %v509_v48 = vmul.f32 %v497_v45, %v497_v45 }
  0xfd   : > { %v502_v49 = vrot.slane %v501_v47, 4  ;;  %v511_v50 = vadd.f32 %v510_v46, %v509_v48 }
  0xff   : > { %v503_v51 = vadd.f32 %v502_v49, %v501_v47  ;;  %v512_v52 = vrot.slane %v511_v50, 4 }
 0x101   : > { %v504_v53 = vrot.slane %v503_v51, 2  ;;  %v513_v54 = vadd.f32 %v512_v52, %v511_v50 }
 0x103   : > { %v505_v55 = vadd.f32 %v504_v53, %v503_v51  ;;  %v514_v56 = vrot.slane %v513_v54, 2 }
 0x105   : > { %v506_v57 = vrot.slane %v505_v55, 1  ;;  %v515_v58 = vadd.f32 %v514_v56, %v513_v54 }
 0x107   : > { %v507_v59 = vadd.f32 %v506_v57, %v505_v55  ;;  %v516_v60 = vrot.slane %v515_v58, 1 }
 0x109   : > { %v517_v61 = vadd.f32 %v516_v60, %v515_v58  ;;  %519 = vst [vmem:[%s211_s13] sm:$0x1] %v507_v59 }
 0x10b   : > { %520 = vst [vmem:[%s214_s18] sm:$0x1] %v517_v61 }
 0x10c PF: > { %s15_s15 = sadd.s32 1, %s783_s15  }
 0x10d   : > { %p12_p4 = scmp.ge.s32.totalorder %s15_s15, 4  }
 0x10f   :  { %14 = sbr.rel (!%p12_p4) target bundleno = 1 (0x1), region = 84 }

</bundles_post_ra>
